<compile_context>
chip_gen: v6e
topology: v6e:2x2x1
jax: 0.10.0
libtpu: 0.0.40
codegen_flags: <defaults>
</compile_context>

<pallas_src>
import functools

import jax
import jax.numpy as jnp
from jax.experimental import pallas as pl
from jax.experimental.pallas import tpu as pltpu


def _ensemble_kernel(x_ref, w_ref, b_ref, o_ref):
    """out = x @ w_eff + b_eff; stored lane-dense when o_ref is [*, g*C]."""
    out = (
        jnp.dot(x_ref[...], w_ref[...], preferred_element_type=jnp.float32)
        + b_ref[...]
    )
    # Reshape is a no-op for the [block_b, C] layout; for the lane-dense layout
    # it folds g=128//C consecutive rows into one 128-lane row (XLU relayout,
    # free slot while the kernel is store/DMA bound).
    o_ref[...] = out.reshape(o_ref.shape).astype(o_ref.dtype)


def _pick_block_b(B):
    """Largest batch tile up to 2048, preferring grid >= 2 (v7x megacore)."""
    for cand in (2048, 1024, 512, 256, 128):
        if B % cand == 0 and B // cand >= 2:
            return cand
    for cand in (2048, 1024, 512, 256, 128):
        if B % cand == 0:
            return cand
    return B  # small / awkward B: single un-tiled block (correct, no tiling)


@functools.partial(jax.jit, static_argnames=("compute_dtype", "out_dtype"))
def stacked_ensemble_forward(x, w_eff, b_eff, *, compute_dtype=None,
                             out_dtype=jnp.float32):
    """
    x       : [B, F]  float32 (optionally cast to compute_dtype, e.g. bf16)
    w_eff   : [F, C]  collapsed weights  = w_wide @ (vstack([W1]*n_folds)/n_folds)
    b_eff   : [1, C]  collapsed bias     = b_wide @ w1_tiled + b1
    returns : [B, C]  mean over folds of level1(cat(base preds))
    """
    B, F = x.shape
    C = w_eff.shape[1]

    if compute_dtype is not None:
        x = x.astype(compute_dtype)
        w_eff = w_eff.astype(compute_dtype)
    b_eff = b_eff.astype(jnp.float32)  # added onto the f32 MXU accumulator

    block_b = _pick_block_b(B)
    grid = (pl.cdiv(B, block_b),)

    # Lane-dense output layout: pack g=128//C rows into one 128-lane row.
    group = (128 // C) if (C > 0 and 128 % C == 0) else 0
    lane_dense = group > 1 and block_b % group == 0 and B % block_b == 0
    if lane_dense:
        out_shape = jax.ShapeDtypeStruct((B // group, group * C), out_dtype)
        out_spec = pl.BlockSpec((block_b // group, group * C), lambda i: (i, 0))
    else:
        out_shape = jax.ShapeDtypeStruct((B, C), out_dtype)
        out_spec = pl.BlockSpec((block_b, C), lambda i: (i, 0))

    # Explicit VMEM budget (double-buffered x/out tiles + resident weights),
    # validated against v7x's 64 MiB physical / 32 MiB default-scoped VMEM.
    x_tile_bytes = block_b * F * x.dtype.itemsize
    out_tile_bytes = block_b * C * jnp.dtype(out_dtype).itemsize
    w_bytes = F * C * w_eff.dtype.itemsize + C * 4
    vmem_limit = int(min(max(4 * (2 * (x_tile_bytes + out_tile_bytes) + w_bytes),
                             4 << 20), 48 << 20))

    out = pl.pallas_call(
        _ensemble_kernel,
        out_shape=out_shape,
        grid_spec=pl.GridSpec(
            grid=grid,
            in_specs=[
                pl.BlockSpec((block_b, F), lambda i: (i, 0)),  # x (batch-tiled)
                pl.BlockSpec((F, C), lambda i: (0, 0)),        # collapsed weights
                pl.BlockSpec((1, C), lambda i: (0, 0)),        # collapsed bias
            ],
            out_specs=out_spec,
        ),
        compiler_params=pltpu.CompilerParams(
            dimension_semantics=("parallel",),   # batch axis only; no fold loop
            vmem_limit_bytes=vmem_limit,
        ),
    )(x, w_eff, b_eff)

    if lane_dense:
        out = out.reshape(B, C)
    return out


def pack_params(base_w, base_b, w1, b1):
    """One-time parameter packing (wrapper-side, outside the kernel).

    base_w : [n_models, n_folds, F, C]   base_b : [n_models, n_folds, C]
    w1     : [M*C, C]                    b1     : [1, C]

    Returns the fully collapsed (w_eff, b_eff). Exact because base heads,
    level1 and the fold-average are all linear.
    """
    n_models, n_folds, F, C = base_w.shape
    MC = n_models * C
    # Per-fold "torch.cat(preds, dim=1)" weights/biases: [n_folds, F, MC] / [n_folds, MC]
    w_folds = jnp.concatenate([base_w[m] for m in range(n_models)], axis=-1)
    b_folds = jnp.concatenate([base_b[m] for m in range(n_models)], axis=-1)
    # Fuse all folds along the output axis: [F, n_folds*MC], [1, n_folds*MC]
    w_wide = jnp.transpose(w_folds, (1, 0, 2)).reshape(F, n_folds * MC)
    b_wide = b_folds.reshape(1, n_folds * MC)
    # Linear level1 => averaging over folds commutes into a tiled, scaled W1.
    w1_tiled = jnp.concatenate([w1] * n_folds, axis=0) / n_folds  # [n_folds*MC, C]
    # Full collapse: one [F, C] weight and one [1, C] bias.
    w_eff = w_wide @ w1_tiled
    b_eff = b_wide @ w1_tiled + b1
    return w_eff, b_eff


def _reference(x, base_w, base_b, w1, b1):
    """Pure-JAX mirror of StackedEnsemble._predict_all_folds."""
    n_models, n_folds = base_w.shape[0], base_w.shape[1]
    all_l1 = []
    for f in range(n_folds):
        preds = []
        for m in range(n_models):
            preds.append(x @ base_w[m, f] + base_b[m, f])   # base model m, fold f
        stacked = jnp.concatenate(preds, axis=1)            # cat along dim=1
        all_l1.append(stacked @ w1 + b1)                    # level1 model
    return jnp.stack(all_l1).mean(axis=0)                   # mean over folds


if __name__ == "__main__":
    # Small deterministic problem sizes implied by the module's forward pass.
    B, F, C = 8, 32, 8          # batch, input features, num classes
    n_models, n_folds = 2, 4    # ensemble members, CV folds
    MC = n_models * C

    key = jax.random.PRNGKey(0)
    kx, kw, kb, kw1, kb1, kx2 = jax.random.split(key, 6)

    x = jax.random.normal(kx, (B, F), dtype=jnp.float32)

    # Base fold models: Linear(F -> C) per (model, fold). Stored as [in, out].
    base_w = 0.1 * jax.random.normal(kw, (n_models, n_folds, F, C), dtype=jnp.float32)
    base_b = 0.1 * jax.random.normal(kb, (n_models, n_folds, C), dtype=jnp.float32)

    # Level-1 model: Linear(M*C -> C).
    w1 = 0.1 * jax.random.normal(kw1, (MC, C), dtype=jnp.float32)
    b1 = 0.1 * jax.random.normal(kb1, (1, C), dtype=jnp.float32)

    w_eff, b_eff = pack_params(base_w, base_b, w1, b1)

    # Case 1: toy batch, f32 — exact check against the fold-by-fold reference.
    out = jax.block_until_ready(stacked_ensemble_forward(x, w_eff, b_eff))
    ref = _reference(x, base_w, base_b, w1, b1)
    assert out.shape == (B, C)
    assert jnp.allclose(out, ref, atol=1e-4, rtol=1e-4), "mismatch vs reference (B=8)"

    # Case 2: larger batch — exercises batch tiling (grid >= 2), the lane-dense
    # [*, 128] output layout, and the bf16 compute path.
    B2 = 512
    x2 = jax.random.normal(kx2, (B2, F), dtype=jnp.float32)
    ref2 = _reference(x2, base_w, base_b, w1, b1)

    out2 = jax.block_until_ready(stacked_ensemble_forward(x2, w_eff, b_eff))
    assert out2.shape == (B2, C)
    assert jnp.allclose(out2, ref2, atol=1e-4, rtol=1e-4), "mismatch vs reference (B=512)"

    out2_bf16 = jax.block_until_ready(
        stacked_ensemble_forward(x2, w_eff, b_eff, compute_dtype=jnp.bfloat16))
    assert jnp.allclose(out2_bf16, ref2, atol=5e-2, rtol=5e-2), "bf16 path mismatch"

    print("KERNEL_OK")
</pallas_src>

<mosaic_0001>
module attributes {stable_mosaic.version = 11 : i64} {
  func.func @_ensemble_kernel(%arg0: i32, %arg1: memref<8x32xf32, #tpu.memory_space<vmem>>, %arg2: memref<32x8xf32, #tpu.memory_space<vmem>>, %arg3: memref<1x8xf32, #tpu.memory_space<vmem>>, %arg4: memref<8x8xf32, #tpu.memory_space<vmem>>) attributes {dimension_semantics = [#tpu.dimension_semantics<parallel>], iteration_bounds = array<i64: 1>, scalar_prefetch = 0 : i64, scratch_operands = 0 : i64, tpu.core_type = #tpu.core_type<tc>, window_params = [{transform_indices = @transform_0, window_bounds = array<i64: 8, 32>}, {pipeline_mode = #tpu.pipeline_mode<synchronous>, transform_indices = @transform_1, window_bounds = array<i64: 32, 8>}, {pipeline_mode = #tpu.pipeline_mode<synchronous>, transform_indices = @transform_2, window_bounds = array<i64: 1, 8>}, {transform_indices = @transform_3, window_bounds = array<i64: 8, 8>}]} {
    %c0 = arith.constant 0 : index
    %c0_0 = arith.constant 0 : index
    %0 = vector.load %arg1[%c0, %c0_0] : memref<8x32xf32, #tpu.memory_space<vmem>>, vector<8x32xf32>
    %c0_1 = arith.constant 0 : index
    %c0_2 = arith.constant 0 : index
    %1 = vector.load %arg2[%c0_1, %c0_2] : memref<32x8xf32, #tpu.memory_space<vmem>>, vector<32x8xf32>
    %cst = arith.constant dense<0.000000e+00> : vector<8x8xf32>
    %2 = tpu.matmul %0, %1, %cst {dimension_numbers = #tpu.dot_dimension_numbers<[1], [0], [0], [1], [0, 0, 1, 1], [], []>} : vector<8x32xf32>, vector<32x8xf32>, vector<8x8xf32> -> vector<8x8xf32>
    %c0_3 = arith.constant 0 : index
    %c0_4 = arith.constant 0 : index
    %3 = vector.load %arg3[%c0_3, %c0_4] : memref<1x8xf32, #tpu.memory_space<vmem>>, vector<1x8xf32>
    %4 = vector.broadcast %3 : vector<1x8xf32> to vector<8x8xf32>
    %5 = arith.addf %2, %4 : vector<8x8xf32>
    %c0_5 = arith.constant 0 : index
    %c0_6 = arith.constant 0 : index
    %6 = vector.load %arg4[%c0_5, %c0_6] : memref<8x8xf32, #tpu.memory_space<vmem>>, vector<8x8xf32>
    tpu.vector_store %arg4[%c0_5, %c0_6], %5 {strides = array<i32>} : memref<8x8xf32, #tpu.memory_space<vmem>>, vector<8x8xf32>,
    return
  }
  func.func @transform_0(%arg0: i32) -> (i32, i32) {
    %c0_i32 = arith.constant 0 : i32
    %c0_i32_0 = arith.constant 0 : i32
    return %arg0, %c0_i32 : i32, i32
  }
  func.func @transform_1(%arg0: i32) -> (i32, i32) {
    %c0_i32 = arith.constant 0 : i32
    %c0_i32_0 = arith.constant 0 : i32
    %c0_i32_1 = arith.constant 0 : i32
    return %c0_i32, %c0_i32_0 : i32, i32
  }
  func.func @transform_2(%arg0: i32) -> (i32, i32) {
    %c0_i32 = arith.constant 0 : i32
    %c0_i32_0 = arith.constant 0 : i32
    %c0_i32_1 = arith.constant 0 : i32
    return %c0_i32, %c0_i32_0 : i32, i32
  }
  func.func @transform_3(%arg0: i32) -> (i32, i32) {
    %c0_i32 = arith.constant 0 : i32
    %c0_i32_0 = arith.constant 0 : i32
    return %arg0, %c0_i32 : i32, i32
  }
}

</mosaic_0001>

<bundles_post_ra>
// kernel: stacked_ensemble_forward.1
= control target key start
LH: loop header
LB: loop body
LE: loop exit
PB: predicated region body
PF: predicated region fallthrough
CT: control target
= control target key end

     0   :  { %v160_v1 = vmov 0.0   ;;  %vm161_vm0 = vmmov 0   ;;  %s204_s0 = inlined_call_operand.vmem [shape: f32[8,32], index: 0, kind: input, shape index: {}]   ;;  %s205_s1 = inlined_call_operand.vmem [shape: f32[32,8], index: 1, kind: input, shape index: {}]   ;;  %s206_s2 = inlined_call_operand.vmem [shape: f32[1,8], index: 2, kind: input, shape index: {}]   ;;  %s207_s3 = inlined_call_operand.hbm [shape: f32[8,8], index: 3, kind: output, shape index: {}]  }
   0x1   :  { %v19_v0 = vld [vmem:[%s205_s1 + $0x18] sm:$0xff]  ;;  %124 = vmatprep.subr.mxu0 %v160_v1  ;;  %v18_v2 = vld [vmem:[%s205_s1 + $0x10] sm:$0xff]  ;;  %132 = vmatprep.mubr.msk.f32.mxu0 %vm161_vm0, %v160_v1 }
   0x2   :  { %125 = vmatpush3.msra.mxu0 %v19_v0 }
   0x3   :  { %8 = vsyncpa [#allocation3], 0  ;;  %126 = vmatprep.subr.mxu0 %v160_v1  ;;  %v17_v3 = vld [vmem:[%s205_s1 + $0x8] sm:$0xff]  ;;  %v16_v4 = vld [vmem:[%s205_s1] sm:$0xff]  ;;  %vm27_vm1 = vcmask 261120   ;;  %s162_s24 = smov [#allocation2]  }
   0x4   :  { %127 = vmatpush3.msra.mxu0 %v18_v2  ;;  %v15_v5 = vld [vmem:[%s204_s0] sm:$0xff]  ;;  %s109_s25 = sshll.u32 %s162_s24, 4  ;;  %vm101_vm2 = vcmask 64512   ;;  %s110_s25 = int_to_ptr.vmem [resolvable:$true] %s109_s25 }
   0x5   :  { %128 = vmatprep.subr.mxu0 %v160_v1  ;;  %v117_v6 = vld [vmem:[%s206_s2] ss:$0 sm:$0xff]  ;;  %s138_s1 = scalar_lea.vmem %s110_s25, 128  ;;  %p143_p1 = scmp.lt.s32.totalorder %s110_s25, %s110_s25 }
   0x6   :  { %129 = vmatpush3.msra.mxu0 %v17_v3  ;;  %p139_p0 = scmp.ne.s32.totalorder %s110_s25, %s138_s1  ;;  %p144_p2 = scmp.lt.s32.totalorder %s138_s1, %s138_s1 }
   0x7   :  { %130 = vmatprep.subr.mxu0 %v160_v1 }
   0x8   :  { %131 = vmatpush3.msra.mxu0 %v16_v4  ;;  %p145_p3 = por %p144_p2, %p143_p1 }
   0x9   :  { %133 = vmatmul.mubr.msk.f32.vlgmr.msra.gmra.mxu0 %vm27_vm1, %v15_v5 }
   0xa   :  { %p146_p4 = pnand %p145_p3, %p139_p0 }
  0xc9   :  { %v97_v7 = vpop.f32.mrf.mxu0 }
  0xca   :  { %v98_v8 = vadd.f32 %v117_v6, %v97_v7 }
  0xcb   :  { %v134_v9 = vpop.f32.mrf.mxu0 }
  0xcc   :  { %102 = vst.msk [vmem:[#allocation2] sm:$0xff] %vm101_vm2, %v98_v8 }
  0xcd   :  { %149 = shalt.err (!%p146_p4)
}
  0xce   :  { %112 = dma.vmem_to_hbm [thread:$0]  %s110_s25, 128, %s207_s3, [#allocation3]  }
  0xcf   :  { %158 = dma.done.wait [#allocation3], 128  }
  0xd0   :  { %159 = vsyncadd [#allocation3], 4294967168 }
  0xd1   :  { %116 = vsyncpa [#allocation3], 1 }

</bundles_post_ra>
